<compile_context>
chip_gen: v5e
topology: v5e:2x2
jax: 0.10.0
libtpu: 0.0.40
codegen_flags: <defaults>
</compile_context>

<pallas_src>
import functools

import jax
import jax.numpy as jnp
from jax import lax
from jax.experimental import pallas as pl
from jax.experimental.pallas import tpu as pltpu


EPS = 1e-5                          # nn.InstanceNorm1d default
_TARGET_BLOCK_ELEMS = 256 * 1024    # ~1 MiB of fp32 per (TP, C, TQ) block
_VMEM_LIMIT_BYTES = 32 * 1024 * 1024


# ----------------------------------------------------------------------------
# tiling helpers
# ----------------------------------------------------------------------------
def _largest_divisor_at_most(n, cap):
    cap = max(1, min(n, cap, 8192))
    for d in range(cap, 0, -1):
        if n % d == 0:
            return d
    return 1


def _choose_tiles(P, C, Q, target_elems):
    """Pick (TP, TQ): TQ lane-dense (multiple of 128 or the full Q); TP | P."""
    max_q = max(128, target_elems // max(C, 1))
    if Q <= max_q:
        tq = Q                        # full lane extent: always a legal block dim
    else:
        tq = (max_q // 128) * 128     # multiple of 128; tail masked in pass 1
    tp_cap = max(1, target_elems // max(C * tq, 1))
    tp = _largest_divisor_at_most(P, tp_cap)
    return tp, tq


# ----------------------------------------------------------------------------
# pass 1: per-channel sum / sum-of-squares (fp32 accumulation)
# ----------------------------------------------------------------------------
def _stats_kernel(x_ref, sum_ref, ssq_ref, *, q_total, tq, mask_tail):
    qi = pl.program_id(1)

    @pl.when(qi == 0)
    def _():
        sum_ref[...] = jnp.zeros_like(sum_ref)
        ssq_ref[...] = jnp.zeros_like(ssq_ref)

    x = x_ref[...].astype(jnp.float32)                       # (TP, C, TQ)
    if mask_tail:
        # last Q tile may run past the array; zero the padded lanes so the
        # statistics use only real elements (divisor stays the true count).
        lane = lax.broadcasted_iota(jnp.int32, x.shape, 2) + qi * tq
        x = jnp.where(lane < q_total, x, 0.0)

    # lane reduce (XLU) per p-slice, then cheap VPU add over the TP axis
    s = jnp.sum(jnp.sum(x, axis=2, keepdims=True), axis=0, keepdims=True)
    ss = jnp.sum(jnp.sum(x * x, axis=2, keepdims=True), axis=0, keepdims=True)
    sum_ref[...] += s                                         # (1, C, 1) resident
    ssq_ref[...] += ss


# ----------------------------------------------------------------------------
# pass 2: fused normalize + affine  (y = x * a + b, per-channel a/b)
# ----------------------------------------------------------------------------
def _norm_kernel(x_ref, a_ref, b_ref, o_ref):
    x = x_ref[...].astype(jnp.float32)                        # (TP, C, TQ)
    a = a_ref[...][None, :, :]                                # (1, C, 1)
    b = b_ref[...][None, :, :]
    o_ref[...] = (x * a + b).astype(o_ref.dtype)


# ----------------------------------------------------------------------------
# driver on the (P, C, Q) view
# ----------------------------------------------------------------------------
def _instance_norm_pcq(x3, gamma, beta, *, block_elems=_TARGET_BLOCK_ELEMS):
    P, C, Q = x3.shape
    tp, tq = _choose_tiles(P, C, Q, block_elems)
    n_p = P // tp
    n_q = pl.cdiv(Q, tq)
    mask_tail = (Q % tq) != 0

    cp_stats = pltpu.CompilerParams(
        dimension_semantics=("parallel", "arbitrary"),
        vmem_limit_bytes=_VMEM_LIMIT_BYTES)
    cp_norm = pltpu.CompilerParams(
        dimension_semantics=("parallel", "parallel"),
        vmem_limit_bytes=_VMEM_LIMIT_BYTES)

    # ---- pass 1: partial per-channel sum / sumsq (one fp32 pair per P tile) --
    kern1 = functools.partial(_stats_kernel, q_total=Q, tq=tq, mask_tail=mask_tail)
    psum, pssq = pl.pallas_call(
        kern1,
        out_shape=(jax.ShapeDtypeStruct((n_p, C, 1), jnp.float32),
                   jax.ShapeDtypeStruct((n_p, C, 1), jnp.float32)),
        grid_spec=pltpu.PrefetchScalarGridSpec(
            num_scalar_prefetch=0,
            grid=(n_p, n_q),
            in_specs=[pl.BlockSpec((tp, C, tq), lambda pi, qi: (pi, 0, qi))],
            out_specs=(pl.BlockSpec((1, C, 1), lambda pi, qi: (pi, 0, 0)),
                       pl.BlockSpec((1, C, 1), lambda pi, qi: (pi, 0, 0)))),
        compiler_params=cp_stats,
    )(x3)

    # ---- tiny per-channel scalar math (C values) -----------------------------
    count = jnp.float32(P * Q)
    total_sum = jnp.sum(psum, axis=(0, 2))                    # (C,)
    total_ssq = jnp.sum(pssq, axis=(0, 2))
    mean = total_sum / count
    var = jnp.maximum(total_ssq / count - mean * mean, 0.0)   # biased variance
    inv = lax.rsqrt(var + EPS)
    a = gamma.astype(jnp.float32) * inv
    b = beta.astype(jnp.float32) - mean * a
    a2 = a[:, None]                                            # (C, 1)
    b2 = b[:, None]

    # ---- pass 2: fused normalize + affine ------------------------------------
    y3 = pl.pallas_call(
        _norm_kernel,
        out_shape=jax.ShapeDtypeStruct((P, C, Q), x3.dtype),
        grid_spec=pltpu.PrefetchScalarGridSpec(
            num_scalar_prefetch=0,
            grid=(n_p, n_q),
            in_specs=[pl.BlockSpec((tp, C, tq), lambda pi, qi: (pi, 0, qi)),
                      pl.BlockSpec((C, 1), lambda pi, qi: (0, 0)),
                      pl.BlockSpec((C, 1), lambda pi, qi: (0, 0))],
            out_specs=pl.BlockSpec((tp, C, tq), lambda pi, qi: (pi, 0, qi))),
        compiler_params=cp_norm,
    )(x3, a2, b2)
    return y3


def reshaped_instance_norm_1d(x, gamma, beta, *, num_features, class_dim,
                              block_elems=_TARGET_BLOCK_ELEMS):
    """Mirrors ReshapedInstanceNorm1d.forward (affine=True), transpose-free."""
    assert 0 <= class_dim < x.ndim
    assert x.shape[class_dim] == num_features

    pre = 1
    for d in x.shape[:class_dim]:
        pre *= d
    post = 1
    for d in x.shape[class_dim + 1:]:
        post *= d

    # contiguous-group reshape: pure metadata, no HBM pass
    x3 = x.reshape(pre, num_features, post)
    y3 = _instance_norm_pcq(x3, gamma, beta, block_elems=block_elems)
    return y3.reshape(x.shape)


# ----------------------------------------------------------------------------
# pure-JAX reference (mirrors the PyTorch permute/reshape path exactly)
# ----------------------------------------------------------------------------
def _reference(x, gamma, beta, *, num_features, class_dim):
    dim_order = [class_dim] + [d for d in range(x.ndim) if d != class_dim]
    restored_order = [(i + 1) if i < class_dim else (0 if i == class_dim else i)
                      for i in range(x.ndim)]
    xp = jnp.transpose(x, dim_order)
    old_shape = xp.shape
    x2 = xp.reshape(num_features, -1).astype(jnp.float32)
    mean = jnp.mean(x2, axis=1, keepdims=True)
    var = jnp.mean((x2 - mean) ** 2, axis=1, keepdims=True)
    y2 = (x2 - mean) * lax.rsqrt(var + EPS)
    y2 = y2 * gamma.reshape(-1, 1) + beta.reshape(-1, 1)
    return jnp.transpose(y2.astype(x.dtype).reshape(old_shape), restored_order)


def _check(x, gamma, beta, *, num_features, class_dim, block_elems=_TARGET_BLOCK_ELEMS):
    out = reshaped_instance_norm_1d(
        x, gamma, beta, num_features=num_features, class_dim=class_dim,
        block_elems=block_elems)
    out = jax.block_until_ready(out)
    ref = _reference(x, gamma, beta, num_features=num_features, class_dim=class_dim)
    assert out.shape == x.shape
    assert jnp.allclose(out, ref, atol=2e-5, rtol=1e-4), "mismatch vs reference"


if __name__ == "__main__":
    key = jax.random.PRNGKey(0)
    k1, k2, k3 = jax.random.split(key, 3)

    # 1) canonical NCL input: (batch=2, channels=4, length=16), class_dim=1
    C1 = 4
    x1 = jax.random.normal(k1, (2, C1, 16), dtype=jnp.float32)
    g1 = 1.0 + 0.05 * jnp.arange(C1, dtype=jnp.float32)
    b1 = 0.1 * jnp.arange(C1, dtype=jnp.float32)
    _check(x1, g1, b1, num_features=C1, class_dim=1)

    # 2) higher-rank input with class_dim=2: (2, 3, 5, 8)
    C2 = 5
    x2 = jax.random.normal(k2, (2, 3, C2, 8), dtype=jnp.float32)
    g2 = 1.0 - 0.03 * jnp.arange(C2, dtype=jnp.float32)
    b2 = -0.2 + 0.1 * jnp.arange(C2, dtype=jnp.float32)
    _check(x2, g2, b2, num_features=C2, class_dim=2)

    # 3) force the tiled/masked-tail path with a tiny block budget:
    #    Q=200 -> TQ=128, two Q tiles, partial last tile masked in the reduction.
    C3 = 4
    x3 = jax.random.normal(k3, (2, C3, 200), dtype=jnp.float32)
    g3 = 1.0 + 0.02 * jnp.arange(C3, dtype=jnp.float32)
    b3 = 0.05 * jnp.arange(C3, dtype=jnp.float32)
    _check(x3, g3, b3, num_features=C3, class_dim=1, block_elems=512)

    print("KERNEL_OK")
</pallas_src>

<mosaic_0001>
module attributes {stable_mosaic.version = 11 : i64} {
  func.func @_stats_kernel(%arg0: i32, %arg1: i32, %arg2: memref<2x4x16xf32, #tpu.memory_space<vmem>>, %arg3: memref<1x4x1xf32, #tpu.memory_space<vmem>>, %arg4: memref<1x4x1xf32, #tpu.memory_space<vmem>>) attributes {dimension_semantics = [#tpu.dimension_semantics<parallel>, #tpu.dimension_semantics<arbitrary>], iteration_bounds = array<i64: 1, 1>, scalar_prefetch = 0 : i64, scratch_operands = 0 : i64, tpu.core_type = #tpu.core_type<tc>, window_params = [{transform_indices = @transform_0, window_bounds = array<i64: 2, 4, 16>}, {transform_indices = @transform_1, window_bounds = array<i64: 1, 4, 1>}, {transform_indices = @transform_2, window_bounds = array<i64: 1, 4, 1>}]} {
    %c0_i32 = arith.constant 0 : i32
    %0 = arith.cmpi eq, %arg1, %c0_i32 : i32
    %1 = arith.extui %0 : i1 to i32
    %c0_i32_0 = arith.constant 0 : i32
    %2 = arith.cmpi ne, %1, %c0_i32_0 : i32
    scf.if %2 {
      %cst_18 = arith.constant 0.000000e+00 : f32
      %19 = vector.broadcast %cst_18 : f32 to vector<1x4x1xf32>
      %c0_19 = arith.constant 0 : index
      %c0_20 = arith.constant 0 : index
      %c0_21 = arith.constant 0 : index
      %20 = vector.load %arg3[%c0_19, %c0_20, %c0_21] : memref<1x4x1xf32, #tpu.memory_space<vmem>>, vector<1x4x1xf32>
      tpu.vector_store %arg3[%c0_19, %c0_20, %c0_21], %19 {strides = array<i32>} : memref<1x4x1xf32, #tpu.memory_space<vmem>>, vector<1x4x1xf32>,
      %cst_22 = arith.constant 0.000000e+00 : f32
      %21 = vector.broadcast %cst_22 : f32 to vector<1x4x1xf32>
      %c0_23 = arith.constant 0 : index
      %c0_24 = arith.constant 0 : index
      %c0_25 = arith.constant 0 : index
      %22 = vector.load %arg4[%c0_23, %c0_24, %c0_25] : memref<1x4x1xf32, #tpu.memory_space<vmem>>, vector<1x4x1xf32>
      tpu.vector_store %arg4[%c0_23, %c0_24, %c0_25], %21 {strides = array<i32>} : memref<1x4x1xf32, #tpu.memory_space<vmem>>, vector<1x4x1xf32>,
    } else {
    }
    %c0 = arith.constant 0 : index
    %c0_1 = arith.constant 0 : index
    %c0_2 = arith.constant 0 : index
    %3 = vector.load %arg2[%c0, %c0_1, %c0_2] : memref<2x4x16xf32, #tpu.memory_space<vmem>>, vector<2x4x16xf32>
    %cst = arith.constant dense<0.000000e+00> : vector<2x4xf32>
    %4 = vector.multi_reduction <add>, %3, %cst [2] : vector<2x4x16xf32> to vector<2x4xf32>
    %5 = vector.shape_cast %4 : vector<2x4xf32> to vector<2x4x1xf32>
    %cst_3 = arith.constant dense<0.000000e+00> : vector<4x1xf32>
    %6 = vector.multi_reduction <add>, %5, %cst_3 [0] : vector<2x4x1xf32> to vector<4x1xf32>
    %7 = vector.shape_cast %6 : vector<4x1xf32> to vector<1x4x1xf32>
    %8 = arith.mulf %3, %3 : vector<2x4x16xf32>
    %cst_4 = arith.constant dense<0.000000e+00> : vector<2x4xf32>
    %9 = vector.multi_reduction <add>, %8, %cst_4 [2] : vector<2x4x16xf32> to vector<2x4xf32>
    %10 = vector.shape_cast %9 : vector<2x4xf32> to vector<2x4x1xf32>
    %cst_5 = arith.constant dense<0.000000e+00> : vector<4x1xf32>
    %11 = vector.multi_reduction <add>, %10, %cst_5 [0] : vector<2x4x1xf32> to vector<4x1xf32>
    %12 = vector.shape_cast %11 : vector<4x1xf32> to vector<1x4x1xf32>
    %c0_6 = arith.constant 0 : index
    %c0_7 = arith.constant 0 : index
    %c0_8 = arith.constant 0 : index
    %13 = vector.load %arg3[%c0_6, %c0_7, %c0_8] : memref<1x4x1xf32, #tpu.memory_space<vmem>>, vector<1x4x1xf32>
    %14 = arith.addf %13, %7 : vector<1x4x1xf32>
    %c0_9 = arith.constant 0 : index
    %c0_10 = arith.constant 0 : index
    %c0_11 = arith.constant 0 : index
    %15 = vector.load %arg3[%c0_9, %c0_10, %c0_11] : memref<1x4x1xf32, #tpu.memory_space<vmem>>, vector<1x4x1xf32>
    tpu.vector_store %arg3[%c0_9, %c0_10, %c0_11], %14 {strides = array<i32>} : memref<1x4x1xf32, #tpu.memory_space<vmem>>, vector<1x4x1xf32>,
    %c0_12 = arith.constant 0 : index
    %c0_13 = arith.constant 0 : index
    %c0_14 = arith.constant 0 : index
    %16 = vector.load %arg4[%c0_12, %c0_13, %c0_14] : memref<1x4x1xf32, #tpu.memory_space<vmem>>, vector<1x4x1xf32>
    %17 = arith.addf %16, %12 : vector<1x4x1xf32>
    %c0_15 = arith.constant 0 : index
    %c0_16 = arith.constant 0 : index
    %c0_17 = arith.constant 0 : index
    %18 = vector.load %arg4[%c0_15, %c0_16, %c0_17] : memref<1x4x1xf32, #tpu.memory_space<vmem>>, vector<1x4x1xf32>
    tpu.vector_store %arg4[%c0_15, %c0_16, %c0_17], %17 {strides = array<i32>} : memref<1x4x1xf32, #tpu.memory_space<vmem>>, vector<1x4x1xf32>,
    return
  }
  func.func @transform_0(%arg0: i32, %arg1: i32) -> (i32, i32, i32) {
    %c0_i32 = arith.constant 0 : i32
    %c0_i32_0 = arith.constant 0 : i32
    return %arg0, %c0_i32, %arg1 : i32, i32, i32
  }
  func.func @transform_1(%arg0: i32, %arg1: i32) -> (i32, i32, i32) {
    %c0_i32 = arith.constant 0 : i32
    %c0_i32_0 = arith.constant 0 : i32
    %c0_i32_1 = arith.constant 0 : i32
    return %arg0, %c0_i32, %c0_i32_0 : i32, i32, i32
  }
  func.func @transform_2(%arg0: i32, %arg1: i32) -> (i32, i32, i32) {
    %c0_i32 = arith.constant 0 : i32
    %c0_i32_0 = arith.constant 0 : i32
    %c0_i32_1 = arith.constant 0 : i32
    return %arg0, %c0_i32, %c0_i32_0 : i32, i32, i32
  }
}

</mosaic_0001>

<bundles_post_ra>
// kernel: tpu_custom_call.1
= control target key start
LH: loop header
LB: loop body
LE: loop exit
PB: predicated region body
PF: predicated region fallthrough
CT: control target
= control target key end

     0   :  { %8 = vsyncpa [#allocation3], 0  ;;  %s103_s12 = smov [#allocation2]   ;;  %s104_s14 = smov 64   ;;  %s147_s0 = inlined_call_operand.hbm [shape: f32[2,4,16], index: 0, kind: input, shape index: {}]   ;;  %s148_s1 = inlined_call_operand.vmem [shape: f32[1,4,1], index: 1, kind: output, shape index: {0}]   ;;  %s149_s2 = inlined_call_operand.vmem [shape: f32[1,4,1], index: 2, kind: output, shape index: {1}]  }
   0x1   :  { %s13_s11 = sshll.u32 %s147_s0, 4  ;;  %s15_s13 = sshll.u32 %s103_s12, 4  ;;  %s14_s11 = int_to_ptr.hbm [resolvable:$true] %s13_s11  ;;  %s16_s13 = int_to_ptr.vmem [resolvable:$true] %s15_s13 }
   0x2   :  { %s105_s15 = smov 4  }
   0x3   :  { %21 = dma.hbm_to_vmem [thread:$0]  %s14_s11, 128, %s16_s13, [#allocation3], %s104_s14, %s104_s14, %s105_s15  }
   0x4   :  { %101 = dma.done.wait [#allocation3], 128  }
   0x5   :  { %102 = vsyncadd [#allocation3], 4294967168  ;;  %vm30_vm0 = vcmask 3072   ;;  %v106_v0 = vmov 0.0   ;;  %vm35_vm1 = vcmask 125952   ;;  %vm42_vm2 = vcmask 1043456  }
   0x6   :  { %31 = vst.msk [vmem:[%s148_s1] sm:$0xf] %vm30_vm0, %v106_v0  ;;  %v33_v1 = vld [vmem:[#allocation2] sm:$0xf]  ;;  %v34_v4 = vld [vmem:[#allocation2 + $0x4] sm:$0xf] }
   0x7   :  { %32 = vst.msk [vmem:[%s149_s2] sm:$0xf] %vm30_vm0, %v106_v0  ;;  %v36_v2 = vsel %vm35_vm1, %v33_v1, 0.0  ;;  %v46_v3 = vmul.f32 %v33_v1, %v33_v1  ;;  %v47_v6 = vmul.f32 %v34_v4, %v34_v4  ;;  %v39_v7 = vsel %vm35_vm1, %v34_v4, 0.0 }
   0x8   :  { %37 = vadd.xlane.f32.xlu0 %v36_v2 }
   0x9   :  { %v48_v5 = vsel %vm35_vm1, %v46_v3, 0.0  ;;  %v51_v8 = vsel %vm35_vm1, %v47_v6, 0.0 }
   0xa   :  { %49 = vadd.xlane.f32.xlu1 %v48_v5 }
   0xd   :  { %v57_v14 = vld [vmem:[%s148_s1] sm:$0xf] }
   0xe   :  { %v61_v19 = vld [vmem:[%s149_s2] sm:$0xf] }
  0x10   :  { %40 = vadd.xlane.f32.xlu0 %v39_v7 }
  0x12   :  { %52 = vadd.xlane.f32.xlu1 %v51_v8 }
  0x7b   :  { %v38_v9 = vpop.xlane.xlu0 %37 }
  0x7c   :  { %v43_v12 = vsel %vm42_vm2, %v38_v9, 0.0 }
  0x7d   :  { %v50_v10 = vpop.xlane.xlu1 %49 }
  0x7e   :  { %v54_v17 = vsel %vm42_vm2, %v50_v10, 0.0 }
  0x83   :  { %v41_v11 = vpop.xlane.xlu0 %40 }
  0x84   :  { %v44_v13 = vsel %vm42_vm2, %v41_v11, 0.0 }
  0x85   :  { %v45_v15 = vadd.f32 %v44_v13, %v43_v12  ;;  %v53_v16 = vpop.xlane.xlu1 %52 }
  0x86   :  { %v55_v18 = vsel %vm42_vm2, %v53_v16, 0.0 }
  0x87   :  { %v58_v20 = vadd.f32 %v57_v14, %v45_v15  ;;  %v56_v21 = vadd.f32 %v55_v18, %v54_v17 }
  0x89   :  { %60 = vst.msk [vmem:[%s148_s1] sm:$0xf] %vm30_vm0, %v58_v20  ;;  %v62_v22 = vadd.f32 %v61_v19, %v56_v21 }
  0x8b   :  { %63 = vst.msk [vmem:[%s149_s2] sm:$0xf] %vm30_vm0, %v62_v22 }
  0x8c   :  { %72 = vsyncpa [#allocation3], 1 }

</bundles_post_ra>
